<compile_context>
chip_gen: v6e
topology: v6e:2x2x1
jax: 0.10.0
libtpu: 0.0.40
codegen_flags: <defaults>
</compile_context>

<pallas_src>
from functools import partial

import jax
import jax.numpy as jnp
from jax.experimental import pallas as pl
from jax.experimental.pallas import tpu as pltpu


# ----------------------------- Pallas kernel --------------------------------
def _generator_kernel(code_ref, w_ref, b_ref, o_ref):
    # code_ref : [B_pad, Z]      bf16 latent block (VMEM-resident across grid)
    # w_ref    : [Z, TN]         bf16 column tile of the decoder weights
    # b_ref    : [1, TN]         f32 bias tile
    # o_ref    : [B_pad, TN]     f32 column tile of the flattened image
    acc = jnp.dot(code_ref[...], w_ref[...], preferred_element_type=jnp.float32)
    o_ref[...] = jnp.tanh(acc + b_ref[...])


def _round_up(x, m):
    return ((x + m - 1) // m) * m


@partial(jax.jit, static_argnames=("img_shape", "weight_dtype",
                                   "vmem_budget_bytes"))
def generate_images(codes, weight, bias, img_shape, *,
                    weight_dtype=jnp.bfloat16,
                    vmem_budget_bytes=40 * 1024 * 1024):
    """Run the generative decoder in Pallas and reshape to NCHW.

    codes  : [B, Z] float32 latent codes
    weight : [Z, N] float32 with N = C*H*W
    bias   : [N]    float32
    img_shape : (C, H, W)
    returns: [B, C, H, W] float32 stimuli
    """
    B, Z = codes.shape
    N = weight.shape[1]
    C, H, W = img_shape
    assert N == C * H * W

    # --- pad batch to a full f32 sublane group -> unmasked (8,128) stores ---
    B_pad = max(8, _round_up(B, 8))
    # --- pad flattened image dim to full lanes ---
    N_128 = _round_up(N, 128)

    # --- choose the column tile from a VMEM budget -------------------------
    # Double-buffered weight tile dominates: 2 * Z * tile_n * w_bytes, plus the
    # double-buffered f32 output tile and bias tile.  Cap the tile so very
    # large N still yields >=2 parallel grid steps (v7x megacore sharding).
    w_bytes = jnp.dtype(weight_dtype).itemsize
    per_lane_col = 2 * Z * w_bytes + 2 * B_pad * 4 + 2 * 4
    tile_cap = max(128, (vmem_budget_bytes // per_lane_col) // 128 * 128)
    tile_cap = min(tile_cap, 4096)
    tile_n = min(N_128, tile_cap)
    N_pad = _round_up(N, tile_n)
    grid_n = N_pad // tile_n

    # --- pad + cast inputs ---------------------------------------------------
    codes_p = jnp.pad(codes, ((0, B_pad - B), (0, 0))).astype(weight_dtype)
    weight_p = jnp.pad(weight, ((0, 0), (0, N_pad - N))).astype(weight_dtype)
    bias_p = jnp.pad(bias, (0, N_pad - N)).reshape(1, N_pad).astype(jnp.float32)

    cost = pl.CostEstimate(
        flops=2 * B_pad * Z * N_pad,
        transcendentals=B_pad * N_pad,
        bytes_accessed=(B_pad * Z * w_bytes + Z * N_pad * w_bytes
                        + N_pad * 4 + B_pad * N_pad * 4),
    )

    flat = pl.pallas_call(
        _generator_kernel,
        out_shape=jax.ShapeDtypeStruct((B_pad, N_pad), jnp.float32),
        grid_spec=pl.GridSpec(
            grid=(grid_n,),
            in_specs=[
                pl.BlockSpec((B_pad, Z), lambda j: (0, 0)),      # codes (resident)
                pl.BlockSpec((Z, tile_n), lambda j: (0, j)),     # weight tile
                pl.BlockSpec((1, tile_n), lambda j: (0, j)),     # bias tile
            ],
            out_specs=pl.BlockSpec((B_pad, tile_n), lambda j: (0, j)),
        ),
        compiler_params=pltpu.CompilerParams(
            dimension_semantics=("parallel",),
            vmem_limit_bytes=64 * 1024 * 1024,
        ),
        cost_estimate=cost,
    )(codes_p, weight_p, bias_p)

    return flat[:B, :N].reshape(B, C, H, W)


# --------------------------- Generator forward ------------------------------
def generator_forward(codes, weight, bias, img_shape, mask=None):
    """Mirror of Generator.forward for the default (all-synthetic) case.

    mask semantics: True -> synthetic image, False -> natural image.  With no
    natural-image dataloader the sanitized mask defaults to all-True, so the
    output is exactly the generated stimuli placed in order.
    """
    gen_img = generate_images(codes, weight, bias, img_shape)   # _forward
    gen_img = gen_img                                           # output_pipe = identity

    B = codes.shape[0]
    if mask is None:
        mask = jnp.ones((B,), dtype=bool)                       # _masking_sanity_check default
    # TODO(synk): interleaving with natural images (out[~mask] = nat_img) needs a
    # DataLoader; with the default all-True mask the scatter is the identity.
    out = gen_img
    labels = []                                                 # msg.label = []
    return out, labels


# --------------------------------- main --------------------------------------
if __name__ == "__main__":
    key = jax.random.PRNGKey(0)
    k_code, k_w, k_b = jax.random.split(key, 3)

    B = 2            # number of latent codes / generated stimuli
    Z = 32           # latent (input_dim) size
    C, H, W = 3, 16, 16
    N = C * H * W    # 768 = 6 * 128 lanes

    codes = jax.random.normal(k_code, (B, Z), dtype=jnp.float32)
    weight = jax.random.normal(k_w, (Z, N), dtype=jnp.float32) * 0.05
    bias = jax.random.normal(k_b, (N,), dtype=jnp.float32) * 0.01

    out, _labels = generator_forward(codes, weight, bias, (C, H, W))
    out = jax.block_until_ready(out)

    # sanity: reference in plain f32 JAX (kernel uses bf16 weights -> loose tol)
    ref = jnp.tanh(codes @ weight + bias).reshape(B, C, H, W)
    assert out.shape == (B, C, H, W)
    assert jnp.allclose(out, ref, atol=3e-2, rtol=3e-2), float(jnp.max(jnp.abs(out - ref)))

    print("KERNEL_OK")
</pallas_src>

<mosaic_0001>
module attributes {stable_mosaic.version = 11 : i64} {
  func.func @_generator_kernel(%arg0: i32, %arg1: memref<8x32xbf16, #tpu.memory_space<vmem>>, %arg2: memref<32x768xbf16, #tpu.memory_space<vmem>>, %arg3: memref<1x768xf32, #tpu.memory_space<vmem>>, %arg4: memref<8x768xf32, #tpu.memory_space<vmem>>) attributes {dimension_semantics = [#tpu.dimension_semantics<parallel>], iteration_bounds = array<i64: 1>, scalar_prefetch = 0 : i64, scratch_operands = 0 : i64, tpu.core_type = #tpu.core_type<tc>, window_params = [{pipeline_mode = #tpu.pipeline_mode<synchronous>, transform_indices = @transform_0, window_bounds = array<i64: 8, 32>}, {transform_indices = @transform_1, window_bounds = array<i64: 32, 768>}, {transform_indices = @transform_2, window_bounds = array<i64: 1, 768>}, {transform_indices = @transform_3, window_bounds = array<i64: 8, 768>}]} {
    %c0 = arith.constant 0 : index
    %c0_0 = arith.constant 0 : index
    %0 = vector.load %arg1[%c0, %c0_0] : memref<8x32xbf16, #tpu.memory_space<vmem>>, vector<8x32xbf16>
    %c0_1 = arith.constant 0 : index
    %c0_2 = arith.constant 0 : index
    %1 = vector.load %arg2[%c0_1, %c0_2] : memref<32x768xbf16, #tpu.memory_space<vmem>>, vector<32x768xbf16>
    %cst = arith.constant dense<0.000000e+00> : vector<8x768xf32>
    %2 = tpu.matmul %0, %1, %cst {dimension_numbers = #tpu.dot_dimension_numbers<[1], [0], [0], [1], [0, 0, 1, 1], [], []>} : vector<8x32xbf16>, vector<32x768xbf16>, vector<8x768xf32> -> vector<8x768xf32>
    %c0_3 = arith.constant 0 : index
    %c0_4 = arith.constant 0 : index
    %3 = vector.load %arg3[%c0_3, %c0_4] : memref<1x768xf32, #tpu.memory_space<vmem>>, vector<1x768xf32>
    %4 = vector.broadcast %3 : vector<1x768xf32> to vector<8x768xf32>
    %5 = arith.addf %2, %4 : vector<8x768xf32>
    %6 = math.tanh %5 : vector<8x768xf32>
    %c0_5 = arith.constant 0 : index
    %c0_6 = arith.constant 0 : index
    %7 = vector.load %arg4[%c0_5, %c0_6] : memref<8x768xf32, #tpu.memory_space<vmem>>, vector<8x768xf32>
    tpu.vector_store %arg4[%c0_5, %c0_6], %6 {strides = array<i32>} : memref<8x768xf32, #tpu.memory_space<vmem>>, vector<8x768xf32>,
    return
  }
  func.func @transform_0(%arg0: i32) -> (i32, i32) {
    %c0_i32 = arith.constant 0 : i32
    %c0_i32_0 = arith.constant 0 : i32
    %c0_i32_1 = arith.constant 0 : i32
    return %c0_i32, %c0_i32_0 : i32, i32
  }
  func.func @transform_1(%arg0: i32) -> (i32, i32) {
    %c0_i32 = arith.constant 0 : i32
    %c0_i32_0 = arith.constant 0 : i32
    return %c0_i32, %arg0 : i32, i32
  }
  func.func @transform_2(%arg0: i32) -> (i32, i32) {
    %c0_i32 = arith.constant 0 : i32
    %c0_i32_0 = arith.constant 0 : i32
    return %c0_i32, %arg0 : i32, i32
  }
  func.func @transform_3(%arg0: i32) -> (i32, i32) {
    %c0_i32 = arith.constant 0 : i32
    %c0_i32_0 = arith.constant 0 : i32
    return %c0_i32, %arg0 : i32, i32
  }
}

</mosaic_0001>

<bundles_post_ra>
// kernel: generate_images.1
= control target key start
LH: loop header
LB: loop body
LE: loop exit
PB: predicated region body
PF: predicated region fallthrough
CT: control target
= control target key end

     0   :  { %v309_v1 = vmov 0   ;;  %vm120_vm0 = vcmask 261120   ;;  %v30_v14 = vlaneseq  ;;  %s390_s1 = inlined_call_operand.vmem [shape: bf16[32,768], index: 1, kind: input, shape index: {}]   ;;  %s391_s0 = inlined_call_operand.vmem [shape: bf16[8,32], index: 0, kind: input, shape index: {}]   ;;  %s392_s2 = inlined_call_operand.vmem [shape: f32[1,768], index: 2, kind: input, shape index: {}]   ;;  %s393_s3 = inlined_call_operand.vmem [shape: f32[8,768], index: 3, kind: output, shape index: {}]  }
   0x1   :  { %v279_v0 = vld [vmem:[%s390_s1 + $0x34] ss:$24 sps:$4 sm:$0xff]   ;;  %156 = vmatprep.mubr.bf16.mxu0 %v309_v1  ;;  %197 = vmatprep.mubr.bf16.mxu1 %v309_v1  ;;  %v281_v2 = vld [vmem:[%s390_s1 + $0x30] ss:$24 sps:$4 sm:$0xff]   ;;  %v284_v4 = vld [vmem:[%s390_s1 + $0x4] ss:$24 sps:$4 sm:$0xff]  }
   0x2   :  { %136 = vmatprep.subr.bf16.mxu0 %v279_v0  ;;  %v282_v3 = vld [vmem:[%s390_s1 + $0x3c] ss:$24 sps:$4 sm:$0xff]   ;;  %v286_v5 = vld [vmem:[%s390_s1 + $0x38] ss:$24 sps:$4 sm:$0xff]   ;;  %v288_v7 = vld [vmem:[%s390_s1 + $0xc] ss:$24 sps:$4 sm:$0xff]  }
   0x3   :  { %137 = vmatpush1.bf16.msra.mxu0 %v281_v2  ;;  %v287_v6 = vld [vmem:[%s390_s1] ss:$24 sps:$4 sm:$0xff]   ;;  %177 = vmatprep.subr.bf16.mxu1 %v282_v3  ;;  %v293_v10 = vld [vmem:[%s390_s1 + $0x44] ss:$24 sps:$4 sm:$0xff]   ;;  %v296_v12 = vld [vmem:[%s390_s1 + $0x14] ss:$24 sps:$4 sm:$0xff]  }
   0x4   :  { %138 = vmatprep.subr.bf16.mxu0 %v284_v4  ;;  %178 = vmatpush1.bf16.msra.mxu1 %v286_v5  ;;  %v290_v8 = vld [vmem:[%s390_s1 + $0x8] ss:$24 sps:$4 sm:$0xff]   ;;  %v31_v15 = vshrl.u32 %v30_v14, 7 }
   0x5   :  { %179 = vmatprep.subr.bf16.mxu1 %v288_v7  ;;  %v15_v9 = vld [vmem:[%s391_s0] sm:$0xf]  ;;  %v294_v13 = vld [vmem:[%s390_s1 + $0x10] ss:$24 sps:$4 sm:$0xff]  }
   0x6   :  { %v291_v11 = vld [vmem:[%s390_s1 + $0x40] ss:$24 sps:$4 sm:$0xff]   ;;  %v32_v16 = vsub.s32 0, %v31_v15  ;;  %v36_v18 = vsub.s32 1, %v31_v15  ;;  %v40_v19 = vsub.s32 2, %v31_v15  ;;  %v44_v21 = vsub.s32 3, %v31_v15 }
   0x7   :  { %139 = vmatpush1.bf16.msra.mxu0 %v287_v6  ;;  %v28_v17 = vld [vmem:[%s392_s2] sm:$0x3f]  ;;  %v48_v27 = vsub.s32 4, %v31_v15  ;;  %v52_v32 = vsub.s32 5, %v31_v15 }
   0x8   :  { %218 = vmatprep.subr.bf16.mxu0 %v293_v10  ;;  %180 = vmatpush1.bf16.msra.mxu1 %v290_v8  ;;  %v33_v20 = vrot.slane %v28_v17, %v32_v16  ;;  %v37_v22 = vrot.slane %v28_v17, %v36_v18  ;;  %v41_v23 = vrot.slane %v28_v17, %v40_v19 }
   0x9   :  { %v45_v26 = vrot.slane %v28_v17, %v44_v21  ;;  %v49_v36 = vrot.slane %v28_v17, %v48_v27  ;;  %v53_v39 = vrot.slane %v28_v17, %v52_v32 }
   0xa   :  { %275 = vmatmul.mubr.msk.bf16.vlgmr.msra.gmra.mxu0 %vm120_vm0, %v15_v9 }
   0xb   :  { %219 = vmatpush1.bf16.msra.mxu0 %v291_v11  ;;  %238 = vmatprep.mubr.bf16.mxu0 %v309_v1 }
   0xc   :  { %276 = vmatmul.mubr.msk.bf16.vlgmr.msra.gmra.mxu1 %vm120_vm0, %v15_v9  ;;  %220 = vmatprep.subr.bf16.mxu0 %v296_v12 }
   0xf   :  { %221 = vmatpush1.bf16.msra.mxu0 %v294_v13 }
  0x12   :  { %277 = vmatmul.mubr.msk.bf16.vlgmr.msra.gmra.mxu0 %vm120_vm0, %v15_v9 }
  0xca   :  { %v158_v24 = vpop.f32.mrf.mxu0 }
  0xcb   :  { %v159_v25 = vadd.f32 %v158_v24, %v33_v20 }
  0xcc   :  { %v160_v28 = vpop.f32.mrf.mxu0  ;;  %v199_v29 = vpop.f32.mrf.mxu1 }
  0xcd   :  { %297 = vtanh.f32 %v159_v25  ;;  %v161_v30 = vadd.f32 %v160_v28, %v37_v22  ;;  %v200_v31 = vadd.f32 %v199_v29, %v41_v23 }
  0xce   :  { %v162_v33 = vpop.f32.mrf.mxu0  ;;  %v201_v34 = vpop.f32.mrf.mxu1 }
  0xcf   :  { %299 = vtanh.f32 %v161_v30  ;;  %v202_v35 = vadd.f32 %v201_v34, %v45_v26 }
  0xd0   :  { %301 = vtanh.f32 %v200_v31  ;;  %v163_v37 = vpop.f32.mrf.mxu0  ;;  %v203_v38 = vpop.f32.mrf.mxu1 }
  0xd1   :  { %303 = vtanh.f32 %v202_v35 }
  0xd2   :  { %v240_v40 = vpop.f32.mrf.mxu0  ;;  %v204_v41 = vpop.f32.mrf.mxu1 }
  0xd3   :  { %v241_v42 = vadd.f32 %v240_v40, %v49_v36 }
  0xd4   :  { %v242_v43 = vpop.f32.mrf.mxu0 }
  0xd5   :  { %305 = vtanh.f32 %v241_v42  ;;  %v243_v44 = vadd.f32 %v242_v43, %v53_v39 }
  0xd6   :  { %v244_v45 = vpop.f32.mrf.mxu0 }
  0xd7   :  { %307 = vtanh.f32 %v243_v44 }
  0xd8   :  { %v245_v46 = vpop.f32.mrf.mxu0 }
  0xda   :  { %v298_v47 = vpop.eup %297 }
  0xdb   :  { %253 = vst [vmem:[%s393_s3] sm:$0xff] %v298_v47 }
  0xdc   :  { %v300_v48 = vpop.eup %299 }
  0xdd   :  { %v302_v49 = vpop.eup %301  ;;  %254 = vst [vmem:[%s393_s3 + $0x8] sm:$0xff] %v300_v48 }
  0xde   :  { %v304_v50 = vpop.eup %303  ;;  %255 = vst [vmem:[%s393_s3 + $0x10] sm:$0xff] %v302_v49 }
  0xdf   :  { %256 = vst [vmem:[%s393_s3 + $0x18] sm:$0xff] %v304_v50 }
  0xe2   :  { %v306_v51 = vpop.eup %305 }
  0xe3   :  { %257 = vst [vmem:[%s393_s3 + $0x20] sm:$0xff] %v306_v51 }
  0xe4   :  { %v308_v52 = vpop.eup %307 }
  0xe5   :  { %258 = vst [vmem:[%s393_s3 + $0x28] sm:$0xff] %v308_v52 }

</bundles_post_ra>
